<compile_context>
chip_gen: v5e
topology: v5e:2x2
jax: 0.10.0
libtpu: 0.0.40
codegen_flags: <defaults>
</compile_context>

<pallas_src>
import jax
import jax.numpy as jnp
from jax.experimental import pallas as pl
from jax.experimental.pallas import tpu as pltpu

IN_DIM = 28 * 28      # 784
HIDDEN = 128
OUT_DIM = 10
PAD_OUT = 128         # lane-dense padded output width
N_LAYERS = 4


def _round_up(n, m):
    return ((n + m - 1) // m) * m


def _select_batch_tile(B):
    """Pick (batch_tile, padded_batch).

    Rules (all static Python on shapes):
      * tiles are multiples of 16 (bf16 packs 16 sublanes per vreg),
      * padding waste is bounded (roughly <= Bp/8, never the old up-to-2x),
      * prefer >=2 grid steps so ("parallel",) shards across v7x's 2 TCs,
      * prefer the largest tile that satisfies the above (amortizes the
        ~0.35 us per-grid-step overhead; 2048-row tiles stay well inside VMEM).
    """
    B16 = _round_up(max(B, 1), 16)
    if B16 <= 32:
        return B16, B16
    best = None
    for bt in (2048, 1024, 512, 256, 128, 64, 32, 16):
        if bt > B16:
            continue
        Bp = _round_up(B16, bt)
        steps = Bp // bt
        waste = Bp - B
        ok_waste = waste <= max(Bp // 8, 32)
        key = (ok_waste, steps >= 2, bt)
        if best is None or key > best[0]:
            best = (key, bt, Bp)
    _, bt, Bp = best
    return bt, Bp


def mlp_kernel(x_ref,
               w0_ref, b0_ref,
               w1_ref, b1_ref,
               w2_ref, b2_ref,
               w3_ref, b3_ref,
               o_ref):
    """Fused 4-layer MLP: (Linear+ReLU) x3 then final Linear (no activation).

    x / weights are bf16 MXU inputs with f32 accumulation; bias-add / ReLU stay
    f32 on the VPU.  Output block is (bt, 128) bf16 (zero-padded last layer)
    -> lane-dense, half-width store.
    """
    h = jnp.dot(x_ref[...], w0_ref[...],
                preferred_element_type=jnp.float32) + b0_ref[...]
    h = jnp.maximum(h, 0.0)

    h = jnp.dot(h.astype(jnp.bfloat16), w1_ref[...],
                preferred_element_type=jnp.float32) + b1_ref[...]
    h = jnp.maximum(h, 0.0)

    h = jnp.dot(h.astype(jnp.bfloat16), w2_ref[...],
                preferred_element_type=jnp.float32) + b2_ref[...]
    h = jnp.maximum(h, 0.0)

    o_ref[...] = (jnp.dot(h.astype(jnp.bfloat16), w3_ref[...],
                          preferred_element_type=jnp.float32)
                  + b3_ref[...]).astype(o_ref.dtype)


def prepare_params(params):
    """One-time conversion to kernel layout (hoisted out of the jitted forward).

    params: list of (W[in, out] f32, b[1, out] f32)  (W is the transpose of the
    PyTorch [out, in] layout).  Returns bf16 weights, f32 biases, with the last
    layer zero-padded from 10 -> 128 output columns for a lane-dense store.
    """
    (w0, b0), (w1, b1), (w2, b2), (w3, b3) = params
    w3p = jnp.pad(w3, ((0, 0), (0, PAD_OUT - OUT_DIM)))
    b3p = jnp.pad(b3, ((0, 0), (0, PAD_OUT - OUT_DIM)))
    return (
        (w0.astype(jnp.bfloat16), b0.astype(jnp.float32)),
        (w1.astype(jnp.bfloat16), b1.astype(jnp.float32)),
        (w2.astype(jnp.bfloat16), b2.astype(jnp.float32)),
        (w3p.astype(jnp.bfloat16), b3p.astype(jnp.float32)),
    )


@jax.jit
def base_model_forward(x, kparams):
    """x: [B, 1, 28, 28] or [B, 784].  kparams: output of prepare_params()."""
    # nn.Flatten + bf16 cast BEFORE padding: single narrow HBM pass over x.
    B = x.shape[0]
    x_bf = x.reshape(B, -1).astype(jnp.bfloat16)
    assert x_bf.shape[1] == IN_DIM

    bt, Bp = _select_batch_tile(B)
    if Bp != B:
        x_bf = jnp.pad(x_bf, ((0, Bp - B), (0, 0)))

    (w0, b0), (w1, b1), (w2, b2), (w3, b3) = kparams

    grid = (Bp // bt,)

    def rep2(i):          # grid-invariant (weights / biases): no re-DMA per step
        return (0, 0)

    in_specs = [
        pl.BlockSpec((bt, IN_DIM), lambda i: (i, 0)),
        pl.BlockSpec((IN_DIM, HIDDEN), rep2), pl.BlockSpec((1, HIDDEN), rep2),
        pl.BlockSpec((HIDDEN, HIDDEN), rep2), pl.BlockSpec((1, HIDDEN), rep2),
        pl.BlockSpec((HIDDEN, HIDDEN), rep2), pl.BlockSpec((1, HIDDEN), rep2),
        pl.BlockSpec((HIDDEN, PAD_OUT), rep2), pl.BlockSpec((1, PAD_OUT), rep2),
    ]
    out_spec = pl.BlockSpec((bt, PAD_OUT), lambda i: (i, 0))

    flops = 2 * Bp * (IN_DIM * HIDDEN + 2 * HIDDEN * HIDDEN + HIDDEN * PAD_OUT)
    bytes_accessed = (
        Bp * IN_DIM * 2                                                    # x (bf16)
        + (IN_DIM * HIDDEN + 2 * HIDDEN * HIDDEN + HIDDEN * PAD_OUT) * 2   # weights (bf16)
        + (3 * HIDDEN + PAD_OUT) * 4                                       # biases (f32)
        + Bp * PAD_OUT * 2                                                 # output (bf16)
    )

    out_padded = pl.pallas_call(
        mlp_kernel,
        out_shape=jax.ShapeDtypeStruct((Bp, PAD_OUT), jnp.bfloat16),
        grid_spec=pltpu.PrefetchScalarGridSpec(
            num_scalar_prefetch=0,
            grid=grid,
            in_specs=in_specs,
            out_specs=out_spec,
        ),
        compiler_params=pltpu.CompilerParams(
            dimension_semantics=("parallel",)),
        cost_estimate=pl.CostEstimate(flops=flops,
                                      transcendentals=0,
                                      bytes_accessed=bytes_accessed),
    )(x_bf, w0, b0, w1, b1, w2, b2, w3, b3)

    # Slice off padded rows / columns; return f32 logits (PyTorch-like dtype).
    return out_padded[:B, :OUT_DIM].astype(jnp.float32)


def init_params(key):
    """Deterministic init matching nn.Linear default: U(-1/sqrt(fan_in), +).

    Weights are stored [in, out] (transpose of PyTorch's [out, in]) so the
    kernel computes x @ W; biases are stored [1, out].
    """
    dims = [(IN_DIM, HIDDEN), (HIDDEN, HIDDEN), (HIDDEN, HIDDEN), (HIDDEN, OUT_DIM)]
    params = []
    for (fan_in, fan_out) in dims:
        key, kw, kb = jax.random.split(key, 3)
        bound = 1.0 / jnp.sqrt(jnp.float32(fan_in))
        w = jax.random.uniform(kw, (fan_in, fan_out), jnp.float32, -bound, bound)
        b = jax.random.uniform(kb, (1, fan_out), jnp.float32, -bound, bound)
        params.append((w, b))
    return params


def reference_forward(x, params, matmul_dtype=jnp.float32):
    """Pure-JAX reference of BaseModel.forward.

    matmul_dtype=bf16 mirrors the kernel's mixed precision (bf16 MXU inputs,
    f32 accumulation, f32 bias/ReLU); matmul_dtype=f32 is the exact PyTorch
    semantics.
    """
    h = x.reshape(x.shape[0], -1).astype(jnp.float32)
    n = len(params)
    for idx, (w, b) in enumerate(params):
        h = jnp.dot(h.astype(matmul_dtype), w.astype(matmul_dtype),
                    preferred_element_type=jnp.float32) + b.astype(jnp.float32)
        if idx != n - 1:
            h = jnp.maximum(h, 0.0)
    return h


if __name__ == "__main__":
    key = jax.random.PRNGKey(0)
    kp, kx = jax.random.split(key)

    params = init_params(kp)
    kparams = prepare_params(params)        # one-time layout/dtype conversion

    # Small MNIST-like batch: [B, 1, 28, 28]
    x = jax.random.normal(kx, (8, 1, 28, 28), jnp.float32)

    out = base_model_forward(x, kparams)
    out = jax.block_until_ready(out)
    assert out.shape == (8, OUT_DIM)

    # Primary check: mixed-precision-matched reference (bf16 MXU, f32 accum).
    ref_bf16 = reference_forward(x, params, matmul_dtype=jnp.bfloat16)
    assert jnp.allclose(out, ref_bf16, atol=2e-2, rtol=2e-2), (
        float(jnp.max(jnp.abs(out - ref_bf16))))

    # Sanity check vs full-f32 PyTorch semantics (loose: bf16 inputs).
    ref_f32 = reference_forward(x, params, matmul_dtype=jnp.float32)
    assert jnp.allclose(out, ref_f32, atol=1e-1, rtol=1e-1), (
        float(jnp.max(jnp.abs(out - ref_f32))))

    print("KERNEL_OK")
</pallas_src>

<mosaic_0001>
module attributes {stable_mosaic.version = 11 : i64} {
  func.func @mlp_kernel(%arg0: i32, %arg1: memref<16x784xbf16, #tpu.memory_space<vmem>>, %arg2: memref<784x128xbf16, #tpu.memory_space<vmem>>, %arg3: memref<1x128xf32, #tpu.memory_space<vmem>>, %arg4: memref<128x128xbf16, #tpu.memory_space<vmem>>, %arg5: memref<1x128xf32, #tpu.memory_space<vmem>>, %arg6: memref<128x128xbf16, #tpu.memory_space<vmem>>, %arg7: memref<1x128xf32, #tpu.memory_space<vmem>>, %arg8: memref<128x128xbf16, #tpu.memory_space<vmem>>, %arg9: memref<1x128xf32, #tpu.memory_space<vmem>>, %arg10: memref<16x128xbf16, #tpu.memory_space<vmem>>) attributes {dimension_semantics = [#tpu.dimension_semantics<parallel>], iteration_bounds = array<i64: 1>, scalar_prefetch = 0 : i64, scratch_operands = 0 : i64, tpu.core_type = #tpu.core_type<tc>, window_params = [{transform_indices = @transform_0, window_bounds = array<i64: 16, 784>}, {pipeline_mode = #tpu.pipeline_mode<synchronous>, transform_indices = @transform_1, window_bounds = array<i64: 784, 128>}, {pipeline_mode = #tpu.pipeline_mode<synchronous>, transform_indices = @transform_2, window_bounds = array<i64: 1, 128>}, {pipeline_mode = #tpu.pipeline_mode<synchronous>, transform_indices = @transform_3, window_bounds = array<i64: 128, 128>}, {pipeline_mode = #tpu.pipeline_mode<synchronous>, transform_indices = @transform_4, window_bounds = array<i64: 1, 128>}, {pipeline_mode = #tpu.pipeline_mode<synchronous>, transform_indices = @transform_5, window_bounds = array<i64: 128, 128>}, {pipeline_mode = #tpu.pipeline_mode<synchronous>, transform_indices = @transform_6, window_bounds = array<i64: 1, 128>}, {pipeline_mode = #tpu.pipeline_mode<synchronous>, transform_indices = @transform_7, window_bounds = array<i64: 128, 128>}, {pipeline_mode = #tpu.pipeline_mode<synchronous>, transform_indices = @transform_8, window_bounds = array<i64: 1, 128>}, {transform_indices = @transform_9, window_bounds = array<i64: 16, 128>}]} {
    %c0 = arith.constant 0 : index
    %c0_0 = arith.constant 0 : index
    %0 = vector.load %arg1[%c0, %c0_0] : memref<16x784xbf16, #tpu.memory_space<vmem>>, vector<16x784xbf16>
    %c0_1 = arith.constant 0 : index
    %c0_2 = arith.constant 0 : index
    %1 = vector.load %arg2[%c0_1, %c0_2] : memref<784x128xbf16, #tpu.memory_space<vmem>>, vector<784x128xbf16>
    %cst = arith.constant dense<0.000000e+00> : vector<16x128xf32>
    %2 = tpu.matmul %0, %1, %cst {dimension_numbers = #tpu.dot_dimension_numbers<[1], [0], [0], [1], [0, 0, 1, 1], [], []>} : vector<16x784xbf16>, vector<784x128xbf16>, vector<16x128xf32> -> vector<16x128xf32>
    %c0_3 = arith.constant 0 : index
    %c0_4 = arith.constant 0 : index
    %3 = vector.load %arg3[%c0_3, %c0_4] : memref<1x128xf32, #tpu.memory_space<vmem>>, vector<1x128xf32>
    %4 = vector.broadcast %3 : vector<1x128xf32> to vector<16x128xf32>
    %5 = arith.addf %2, %4 : vector<16x128xf32>
    %cst_5 = arith.constant 0.000000e+00 : f32
    %6 = vector.broadcast %cst_5 : f32 to vector<16x128xf32>
    %7 = arith.maximumf %5, %6 : vector<16x128xf32>
    %8 = arith.truncf %7 : vector<16x128xf32> to vector<16x128xbf16>
    %c0_6 = arith.constant 0 : index
    %c0_7 = arith.constant 0 : index
    %9 = vector.load %arg4[%c0_6, %c0_7] : memref<128x128xbf16, #tpu.memory_space<vmem>>, vector<128x128xbf16>
    %cst_8 = arith.constant dense<0.000000e+00> : vector<16x128xf32>
    %10 = tpu.matmul %8, %9, %cst_8 {dimension_numbers = #tpu.dot_dimension_numbers<[1], [0], [0], [1], [0, 0, 1, 1], [], []>} : vector<16x128xbf16>, vector<128x128xbf16>, vector<16x128xf32> -> vector<16x128xf32>
    %c0_9 = arith.constant 0 : index
    %c0_10 = arith.constant 0 : index
    %11 = vector.load %arg5[%c0_9, %c0_10] : memref<1x128xf32, #tpu.memory_space<vmem>>, vector<1x128xf32>
    %12 = vector.broadcast %11 : vector<1x128xf32> to vector<16x128xf32>
    %13 = arith.addf %10, %12 : vector<16x128xf32>
    %cst_11 = arith.constant 0.000000e+00 : f32
    %14 = vector.broadcast %cst_11 : f32 to vector<16x128xf32>
    %15 = arith.maximumf %13, %14 : vector<16x128xf32>
    %16 = arith.truncf %15 : vector<16x128xf32> to vector<16x128xbf16>
    %c0_12 = arith.constant 0 : index
    %c0_13 = arith.constant 0 : index
    %17 = vector.load %arg6[%c0_12, %c0_13] : memref<128x128xbf16, #tpu.memory_space<vmem>>, vector<128x128xbf16>
    %cst_14 = arith.constant dense<0.000000e+00> : vector<16x128xf32>
    %18 = tpu.matmul %16, %17, %cst_14 {dimension_numbers = #tpu.dot_dimension_numbers<[1], [0], [0], [1], [0, 0, 1, 1], [], []>} : vector<16x128xbf16>, vector<128x128xbf16>, vector<16x128xf32> -> vector<16x128xf32>
    %c0_15 = arith.constant 0 : index
    %c0_16 = arith.constant 0 : index
    %19 = vector.load %arg7[%c0_15, %c0_16] : memref<1x128xf32, #tpu.memory_space<vmem>>, vector<1x128xf32>
    %20 = vector.broadcast %19 : vector<1x128xf32> to vector<16x128xf32>
    %21 = arith.addf %18, %20 : vector<16x128xf32>
    %cst_17 = arith.constant 0.000000e+00 : f32
    %22 = vector.broadcast %cst_17 : f32 to vector<16x128xf32>
    %23 = arith.maximumf %21, %22 : vector<16x128xf32>
    %24 = arith.truncf %23 : vector<16x128xf32> to vector<16x128xbf16>
    %c0_18 = arith.constant 0 : index
    %c0_19 = arith.constant 0 : index
    %25 = vector.load %arg8[%c0_18, %c0_19] : memref<128x128xbf16, #tpu.memory_space<vmem>>, vector<128x128xbf16>
    %cst_20 = arith.constant dense<0.000000e+00> : vector<16x128xf32>
    %26 = tpu.matmul %24, %25, %cst_20 {dimension_numbers = #tpu.dot_dimension_numbers<[1], [0], [0], [1], [0, 0, 1, 1], [], []>} : vector<16x128xbf16>, vector<128x128xbf16>, vector<16x128xf32> -> vector<16x128xf32>
    %c0_21 = arith.constant 0 : index
    %c0_22 = arith.constant 0 : index
    %27 = vector.load %arg9[%c0_21, %c0_22] : memref<1x128xf32, #tpu.memory_space<vmem>>, vector<1x128xf32>
    %28 = vector.broadcast %27 : vector<1x128xf32> to vector<16x128xf32>
    %29 = arith.addf %26, %28 : vector<16x128xf32>
    %30 = arith.truncf %29 : vector<16x128xf32> to vector<16x128xbf16>
    %c0_23 = arith.constant 0 : index
    %c0_24 = arith.constant 0 : index
    %31 = vector.load %arg10[%c0_23, %c0_24] : memref<16x128xbf16, #tpu.memory_space<vmem>>, vector<16x128xbf16>
    tpu.vector_store %arg10[%c0_23, %c0_24], %30 {strides = array<i32>} : memref<16x128xbf16, #tpu.memory_space<vmem>>, vector<16x128xbf16>,
    return
  }
  func.func @transform_0(%arg0: i32) -> (i32, i32) {
    %c0_i32 = arith.constant 0 : i32
    %c0_i32_0 = arith.constant 0 : i32
    return %arg0, %c0_i32 : i32, i32
  }
  func.func @transform_1(%arg0: i32) -> (i32, i32) {
    %c0_i32 = arith.constant 0 : i32
    %c0_i32_0 = arith.constant 0 : i32
    %c0_i32_1 = arith.constant 0 : i32
    return %c0_i32, %c0_i32_0 : i32, i32
  }
  func.func @transform_2(%arg0: i32) -> (i32, i32) {
    %c0_i32 = arith.constant 0 : i32
    %c0_i32_0 = arith.constant 0 : i32
    %c0_i32_1 = arith.constant 0 : i32
    return %c0_i32, %c0_i32_0 : i32, i32
  }
  func.func @transform_3(%arg0: i32) -> (i32, i32) {
    %c0_i32 = arith.constant 0 : i32
    %c0_i32_0 = arith.constant 0 : i32
    %c0_i32_1 = arith.constant 0 : i32
    return %c0_i32, %c0_i32_0 : i32, i32
  }
  func.func @transform_4(%arg0: i32) -> (i32, i32) {
    %c0_i32 = arith.constant 0 : i32
    %c0_i32_0 = arith.constant 0 : i32
    %c0_i32_1 = arith.constant 0 : i32
    return %c0_i32, %c0_i32_0 : i32, i32
  }
  func.func @transform_5(%arg0: i32) -> (i32, i32) {
    %c0_i32 = arith.constant 0 : i32
    %c0_i32_0 = arith.constant 0 : i32
    %c0_i32_1 = arith.constant 0 : i32
    return %c0_i32, %c0_i32_0 : i32, i32
  }
  func.func @transform_6(%arg0: i32) -> (i32, i32) {
    %c0_i32 = arith.constant 0 : i32
    %c0_i32_0 = arith.constant 0 : i32
    %c0_i32_1 = arith.constant 0 : i32
    return %c0_i32, %c0_i32_0 : i32, i32
  }
  func.func @transform_7(%arg0: i32) -> (i32, i32) {
    %c0_i32 = arith.constant 0 : i32
    %c0_i32_0 = arith.constant 0 : i32
    %c0_i32_1 = arith.constant 0 : i32
    return %c0_i32, %c0_i32_0 : i32, i32
  }
  func.func @transform_8(%arg0: i32) -> (i32, i32) {
    %c0_i32 = arith.constant 0 : i32
    %c0_i32_0 = arith.constant 0 : i32
    %c0_i32_1 = arith.constant 0 : i32
    return %c0_i32, %c0_i32_0 : i32, i32
  }
  func.func @transform_9(%arg0: i32) -> (i32, i32) {
    %c0_i32 = arith.constant 0 : i32
    %c0_i32_0 = arith.constant 0 : i32
    return %arg0, %c0_i32 : i32, i32
  }
}

</mosaic_0001>

<bundles_post_ra>
// kernel: base_model_forward.1
= control target key start
LH: loop header
LB: loop body
LE: loop exit
PB: predicated region body
PF: predicated region fallthrough
CT: control target
= control target key end

     0   :  { %vm472_vm0 = vcmask 130048   ;;  %s1573_s1 = inlined_call_operand.vmem [shape: bf16[784,128], index: 1, kind: input, shape index: {}]   ;;  %s1574_s2 = inlined_call_operand.vmem [shape: f32[1,128], index: 2, kind: input, shape index: {}]   ;;  %s1575_s0 = inlined_call_operand.vmem [shape: bf16[16,784], index: 0, kind: input, shape index: {}]   ;;  %s1576_s4 = inlined_call_operand.vmem [shape: f32[1,128], index: 4, kind: input, shape index: {}]   ;;  %s1577_s3 = inlined_call_operand.vmem [shape: bf16[128,128], index: 3, kind: input, shape index: {}]   ;;  %s1578_s5 = inlined_call_operand.vmem [shape: bf16[128,128], index: 5, kind: input, shape index: {}]   ;;  %s1579_s6 = inlined_call_operand.vmem [shape: f32[1,128], index: 6, kind: input, shape index: {}]   ;;  %s1580_s7 = inlined_call_operand.vmem [shape: bf16[128,128], index: 7, kind: input, shape index: {}]   ;;  %s1581_s8 = inlined_call_operand.vmem [shape: f32[1,128], index: 8, kind: input, shape index: {}]   ;;  %s1582_s9 = inlined_call_operand.vmem [shape: bf16[16,128], index: 9, kind: output, shape index: {}]  }
   0x1   :  { %v1172_v0 = vld [vmem:[%s1573_s1 + $0x38] sm:$0xff]  ;;  %v1171_v4 = vld [vmem:[%s1573_s1 + $0x30] sm:$0xff]  ;;  %v1170_v8 = vld [vmem:[%s1573_s1 + $0x28] sm:$0xff] }
   0x2   :  { %v1180_v1 = vld [vmem:[%s1573_s1 + $0x78] sm:$0xff]  ;;  %476 = vmatpush.bf16.msra.mxu0 %v1172_v0  ;;  %v1179_v5 = vld [vmem:[%s1573_s1 + $0x70] sm:$0xff]  ;;  %v1178_v9 = vld [vmem:[%s1573_s1 + $0x68] sm:$0xff] }
   0x3   :  { %v1188_v2 = vld [vmem:[%s1573_s1 + $0xb8] sm:$0xff]  ;;  %490 = vmatpush.bf16.msra.mxu1 %v1180_v1  ;;  %v1187_v6 = vld [vmem:[%s1573_s1 + $0xb0] sm:$0xff]  ;;  %v1186_v10 = vld [vmem:[%s1573_s1 + $0xa8] sm:$0xff] }
   0x4   :  { %v1196_v3 = vld [vmem:[%s1573_s1 + $0xf8] sm:$0xff]  ;;  %504 = vmatpush.bf16.msra.mxu2 %v1188_v2  ;;  %v1195_v7 = vld [vmem:[%s1573_s1 + $0xf0] sm:$0xff]  ;;  %v1194_v11 = vld [vmem:[%s1573_s1 + $0xe8] sm:$0xff] }
   0x5   :  { %518 = vmatpush.bf16.msra.mxu3 %v1196_v3  ;;  %v1169_v12 = vld [vmem:[%s1573_s1 + $0x20] sm:$0xff]  ;;  %v1168_v16 = vld [vmem:[%s1573_s1 + $0x18] sm:$0xff]  ;;  %v1167_v20 = vld [vmem:[%s1573_s1 + $0x10] sm:$0xff] }
   0x6   :  { %477 = vmatpush.bf16.msra.mxu0 %v1171_v4  ;;  %v1177_v13 = vld [vmem:[%s1573_s1 + $0x60] sm:$0xff]  ;;  %v1176_v17 = vld [vmem:[%s1573_s1 + $0x58] sm:$0xff]  ;;  %v1175_v21 = vld [vmem:[%s1573_s1 + $0x50] sm:$0xff] }
   0x7   :  { %491 = vmatpush.bf16.msra.mxu1 %v1179_v5  ;;  %v1185_v14 = vld [vmem:[%s1573_s1 + $0xa0] sm:$0xff]  ;;  %v1184_v18 = vld [vmem:[%s1573_s1 + $0x98] sm:$0xff]  ;;  %v1183_v22 = vld [vmem:[%s1573_s1 + $0x90] sm:$0xff] }
   0x8   :  { %505 = vmatpush.bf16.msra.mxu2 %v1187_v6  ;;  %v1193_v15 = vld [vmem:[%s1573_s1 + $0xe0] sm:$0xff]  ;;  %v1192_v19 = vld [vmem:[%s1573_s1 + $0xd8] sm:$0xff]  ;;  %v1191_v23 = vld [vmem:[%s1573_s1 + $0xd0] sm:$0xff] }
   0x9   :  { %519 = vmatpush.bf16.msra.mxu3 %v1195_v7  ;;  %v1166_v24 = vld [vmem:[%s1573_s1 + $0x8] sm:$0xff]  ;;  %v1165_v28 = vld [vmem:[%s1573_s1] sm:$0xff]  ;;  %v1161_v31 = vld [vmem:[%s1575_s0 + $0x18] sm:$0xf0] }
   0xa   :  { %478 = vmatpush.bf16.msra.mxu0 %v1170_v8  ;;  %v1174_v25 = vld [vmem:[%s1573_s1 + $0x48] sm:$0xff]  ;;  %v1173_v29 = vld [vmem:[%s1573_s1 + $0x40] sm:$0xff]  ;;  %v1204_v34 = vld [vmem:[%s1573_s1 + $0x138] sm:$0xff] }
   0xb   :  { %492 = vmatpush.bf16.msra.mxu1 %v1178_v9  ;;  %v1182_v26 = vld [vmem:[%s1573_s1 + $0x88] sm:$0xff]  ;;  %v839_v30 = vld [vmem:[%s1575_s0] sm:$0xf]  ;;  %v1158_v32 = vld [vmem:[%s1575_s0 + $0x4] sm:$0xf] }
   0xc   :  { %506 = vmatpush.bf16.msra.mxu2 %v1186_v10  ;;  %v1190_v27 = vld [vmem:[%s1573_s1 + $0xc8] sm:$0xff]  ;;  %v841_v33 = vld [vmem:[%s1575_s0 + $0x1c] sm:$0xf0]  ;;  %v1212_v35 = vld [vmem:[%s1573_s1 + $0x178] sm:$0xff]  ;;  %v840_v40 = vor.u32 %v1161_v31, %v839_v30 }
   0xd   :  { %520 = vmatpush.bf16.msra.mxu3 %v1194_v11  ;;  %v1181_v36 = vld [vmem:[%s1573_s1 + $0x80] sm:$0xff]  ;;  %v847_v38 = vld [vmem:[%s1575_s0 + $0x8] sm:$0xf]  ;;  %v1159_v41 = vld [vmem:[%s1575_s0 + $0xc] sm:$0xf]  ;;  %v844_v43 = vor.u32 %v1158_v32, %v841_v33 }
   0xe   :  { %479 = vmatpush.bf16.msra.mxu0 %v1169_v12  ;;  %v1189_v37 = vld [vmem:[%s1573_s1 + $0xc0] sm:$0xff]  ;;  %v849_v42 = vld [vmem:[%s1575_s0 + $0x24] sm:$0xf0]  ;;  %v1203_v45 = vld [vmem:[%s1573_s1 + $0x130] sm:$0xff] }
   0xf   :  { %493 = vmatpush.bf16.msra.mxu1 %v1177_v13  ;;  %v1162_v39 = vld [vmem:[%s1575_s0 + $0x20] sm:$0xf0]  ;;  %v1211_v46 = vld [vmem:[%s1573_s1 + $0x170] sm:$0xff]  ;;  %v852_v48 = vor.u32 %v1159_v41, %v849_v42  ;;  %v1202_v49 = vld [vmem:[%s1573_s1 + $0x128] sm:$0xff] }
  0x10   :  { %507 = vmatpush.bf16.msra.mxu2 %v1185_v14  ;;  %v1213_v44 = vld [vmem:[%s1573_s1 + $0x180] sm:$0xff]  ;;  %v848_v47 = vor.u32 %v1162_v39, %v847_v38  ;;  %v1210_v50 = vld [vmem:[%s1573_s1 + $0x168] sm:$0xff]  ;;  %v1200_v53 = vld [vmem:[%s1573_s1 + $0x118] sm:$0xff] }
  0x11   :  { %521 = vmatpush.bf16.msra.mxu3 %v1193_v15  ;;  %v1201_v51 = vld [vmem:[%s1573_s1 + $0x120] sm:$0xff]  ;;  %v1208_v54 = vld [vmem:[%s1573_s1 + $0x158] sm:$0xff]  ;;  %v1164_v56 = vld [vmem:[%s1575_s0 + $0x30] sm:$0xf0] }
  0x12   :  { %480 = vmatpush.bf16.msra.mxu0 %v1168_v16  ;;  %v1209_v52 = vld [vmem:[%s1573_s1 + $0x160] sm:$0xff]  ;;  %v863_v55 = vld [vmem:[%s1575_s0 + $0x18] sm:$0xf]  ;;  %v1199_v57 = vld [vmem:[%s1573_s1 + $0x110] sm:$0xff] }
  0x13   :  { %494 = vmatpush.bf16.msra.mxu1 %v1176_v17  ;;  %v1207_v58 = vld [vmem:[%s1573_s1 + $0x150] sm:$0xff]  ;;  %v864_v59 = vor.u32 %v1164_v56, %v863_v55  ;;  %v1198_v60 = vld [vmem:[%s1573_s1 + $0x108] sm:$0xff]  ;;  %v1197_v62 = vld [vmem:[%s1573_s1 + $0x100] sm:$0xff] }
  0x14   :  { %508 = vmatpush.bf16.msra.mxu2 %v1184_v18  ;;  %v1206_v61 = vld [vmem:[%s1573_s1 + $0x148] sm:$0xff]  ;;  %v1205_v63 = vld [vmem:[%s1573_s1 + $0x140] sm:$0xff]  ;;  %v855_v0 = vld [vmem:[%s1575_s0 + $0x10] sm:$0xf] }
  0x15   :  { %522 = vmatpush.bf16.msra.mxu3 %v1192_v19  ;;  %v1163_v1 = vld [vmem:[%s1575_s0 + $0x28] sm:$0xf0]  ;;  %v1160_v2 = vld [vmem:[%s1575_s0 + $0x14] sm:$0xf]  ;;  %v857_v3 = vld [vmem:[%s1575_s0 + $0x2c] sm:$0xf0] }
  0x16   :  { %481 = vmatpush.bf16.msra.mxu0 %v1167_v20  ;;  %v856_v4 = vor.u32 %v1163_v1, %v855_v0  ;;  %v860_v5 = vor.u32 %v1160_v2, %v857_v3  ;;  %v1221_v6 = vld [vmem:[%s1577_s3 + $0x38] sm:$0xff]  ;;  %v1220_v7 = vld [vmem:[%s1577_s3 + $0x30] sm:$0xff]  ;;  %v1219_v8 = vld [vmem:[%s1577_s3 + $0x28] sm:$0xff] }
  0x17   :  { %495 = vmatpush.bf16.msra.mxu1 %v1175_v21  ;;  %v1218_v9 = vld [vmem:[%s1577_s3 + $0x20] sm:$0xff]  ;;  %v1217_v10 = vld [vmem:[%s1577_s3 + $0x18] sm:$0xff]  ;;  %v1216_v11 = vld [vmem:[%s1577_s3 + $0x10] sm:$0xff] }
  0x18   :  { %509 = vmatpush.bf16.msra.mxu2 %v1183_v22  ;;  %v1215_v12 = vld [vmem:[%s1577_s3 + $0x8] sm:$0xff]  ;;  %v1214_v16 = vld [vmem:[%s1577_s3] sm:$0xff]  ;;  %v1229_v18 = vld [vmem:[%s1578_s5 + $0x38] sm:$0xff] }
  0x19   :  { %523 = vmatpush.bf16.msra.mxu3 %v1191_v23  ;;  %v1243_v17 = vld [vmem:[%s1574_s2] ss:$0 sm:$0xff]  ;;  %v1228_v20 = vld [vmem:[%s1578_s5 + $0x30] sm:$0xff]  ;;  %v1235_v56 = vld [vmem:[%s1580_s7 + $0x28] sm:$0xff] }
  0x1a   :  { %482 = vmatpush.bf16.msra.mxu0 %v1166_v24  ;;  %v1236_v55 = vld [vmem:[%s1580_s7 + $0x30] sm:$0xff]  ;;  %v1233_v2 = vld [vmem:[%s1580_s7 + $0x18] sm:$0xff] }
  0x1b   :  { %496 = vmatpush.bf16.msra.mxu1 %v1174_v25  ;;  %v1227_v25 = vld [vmem:[%s1578_s5 + $0x28] sm:$0xff]  ;;  %v1232_v3 = vld [vmem:[%s1580_s7 + $0x10] sm:$0xff] }
  0x1c   :  { %510 = vmatpush.bf16.msra.mxu2 %v1182_v26 }
  0x1d   :  { %524 = vmatpush.bf16.msra.mxu3 %v1190_v27 }
  0x1e   :  { %483 = vmatpush.bf16.msra.mxu0 %v1165_v28 }
  0x1f   :  { %497 = vmatpush.bf16.msra.mxu1 %v1173_v29  ;;  %v1226_v29 = vld [vmem:[%s1578_s5 + $0x20] sm:$0xff] }
  0x20   :  { %511 = vmatpush.bf16.msra.mxu2 %v1181_v36 }
  0x21   :  { %525 = vmatpush.bf16.msra.mxu3 %v1189_v37  ;;  %484 = vmatmul.bf16.vlgmr.msra.gmra.mxu0 %v840_v40 }
  0x22   :  { %532 = vmatpush.bf16.msrb.mxu0 %v1204_v34  ;;  %498 = vmatmul.bf16.vlgmr.msra.gmra.mxu1 %v844_v43 }
  0x23   :  { %546 = vmatpush.bf16.msrb.mxu1 %v1212_v35  ;;  %512 = vmatmul.bf16.vlgmr.msra.gmra.mxu2 %v848_v47 }
  0x24   :  { %567 = vmatpush.bf16.msrb.mxu2 %v1213_v44  ;;  %526 = vmatmul.bf16.vlgmr.msra.gmra.mxu3 %v852_v48 }
  0x25   :  { %645 = vmatpush.bf16.msrb.mxu3 %v1221_v6 }
  0x26   :  { %533 = vmatpush.bf16.msrb.mxu0 %v1203_v45 }
  0x27   :  { %547 = vmatpush.bf16.msrb.mxu1 %v1211_v46 }
  0x28   :  { %730 = vmatpush.bf16.msra.mxu2 %v1229_v18 }
  0x29   :  { %646 = vmatpush.bf16.msrb.mxu3 %v1220_v7  ;;  %v1245_v7 = vld [vmem:[%s1579_s6] ss:$0 sm:$0xff] }
  0x2a   :  { %534 = vmatpush.bf16.msrb.mxu0 %v1202_v49 }
  0x2b   :  { %548 = vmatpush.bf16.msrb.mxu1 %v1210_v50  ;;  %v1225_v50 = vld [vmem:[%s1578_s5 + $0x18] sm:$0xff] }
  0x2c   :  { %731 = vmatpush.bf16.msra.mxu2 %v1228_v20 }
  0x2d   :  { %647 = vmatpush.bf16.msrb.mxu3 %v1219_v8 }
  0x2e   :  { %535 = vmatpush.bf16.msrb.mxu0 %v1201_v51  ;;  %v1224_v51 = vld [vmem:[%s1578_s5 + $0x10] sm:$0xff] }
  0x2f   :  { %549 = vmatpush.bf16.msrb.mxu1 %v1209_v52  ;;  %v1223_v52 = vld [vmem:[%s1578_s5 + $0x8] sm:$0xff] }
  0x30   :  { %732 = vmatpush.bf16.msra.mxu2 %v1227_v25 }
  0x31   :  { %648 = vmatpush.bf16.msrb.mxu3 %v1218_v9 }
  0x32   :  { %536 = vmatpush.bf16.msrb.mxu0 %v1200_v53  ;;  %v1222_v53 = vld [vmem:[%s1578_s5] sm:$0xff] }
  0x33   :  { %550 = vmatpush.bf16.msrb.mxu1 %v1208_v54  ;;  %1061 = vmatmul.msk.bf16.vlgmr.msrb.gmra.mxu2 %vm472_vm0, %v864_v59  ;;  %v1237_v54 = vld [vmem:[%s1580_s7 + $0x38] sm:$0xff]  ;;  %v1244_v59 = vld [vmem:[%s1576_s4] ss:$0 sm:$0xff] }
  0x34   :  { %733 = vmatpush.bf16.msra.mxu2 %v1226_v29 }
  0x35   :  { %649 = vmatpush.bf16.msrb.mxu3 %v1217_v10 }
  0x36   :  { %537 = vmatpush.bf16.msrb.mxu0 %v1199_v57  ;;  %v1234_v57 = vld [vmem:[%s1580_s7 + $0x20] sm:$0xff] }
  0x37   :  { %551 = vmatpush.bf16.msrb.mxu1 %v1207_v58 }
  0x38   :  { %734 = vmatpush.bf16.msra.mxu2 %v1225_v50 }
  0x39   :  { %650 = vmatpush.bf16.msrb.mxu3 %v1216_v11 }
  0x3a   :  { %538 = vmatpush.bf16.msrb.mxu0 %v1198_v60 }
  0x3b   :  { %552 = vmatpush.bf16.msrb.mxu1 %v1206_v61 }
  0x3c   :  { %735 = vmatpush.bf16.msra.mxu2 %v1224_v51 }
  0x3d   :  { %651 = vmatpush.bf16.msrb.mxu3 %v1215_v12 }
  0x3e   :  { %539 = vmatpush.bf16.msrb.mxu0 %v1197_v62 }
  0x3f   :  { %553 = vmatpush.bf16.msrb.mxu1 %v1205_v63 }
  0x40   :  { %736 = vmatpush.bf16.msra.mxu2 %v1223_v52 }
  0x41   :  { %540 = vmatmul.bf16.vlgmr.msrb.gmra.mxu0 %v856_v4  ;;  %652 = vmatpush.bf16.msrb.mxu3 %v1214_v16  ;;  %v1231_v4 = vld [vmem:[%s1580_s7 + $0x8] sm:$0xff] }
  0x42   :  { %554 = vmatmul.bf16.vlgmr.msrb.gmra.mxu1 %v860_v5  ;;  %815 = vmatpush.bf16.msra.mxu0 %v1237_v54  ;;  %v1230_v5 = vld [vmem:[%s1580_s7] sm:$0xff] }
  0x44   :  { %737 = vmatpush.bf16.msra.mxu2 %v1222_v53 }
  0x46   :  { %816 = vmatpush.bf16.msra.mxu0 %v1236_v55 }
  0x4a   :  { %817 = vmatpush.bf16.msra.mxu0 %v1235_v56 }
  0x4e   :  { %818 = vmatpush.bf16.msra.mxu0 %v1234_v57 }
  0x52   :  { %819 = vmatpush.bf16.msra.mxu0 %v1233_v2 }
  0x56   :  { %820 = vmatpush.bf16.msra.mxu0 %v1232_v3 }
  0x5a   :  { %821 = vmatpush.bf16.msra.mxu0 %v1231_v4 }
  0x5e   :  { %822 = vmatpush.bf16.msra.mxu0 %v1230_v5 }
  0x9e   :  { %v485_v13 = vpop.f32.mrf.mxu0 }
  0x9f   :  { %v499_v14 = vpop.f32.mrf.mxu1  ;;  %v486_v19 = vadd.f32 %v1243_v17, %v485_v13 }
  0xa1   :  { %v500_v24 = vadd.f32 %v499_v14, %v486_v19 }
  0xa6   :  { %v513_v15 = vpop.f32.mrf.mxu2  ;;  %v487_v21 = vpop.f32.mrf.mxu0 }
  0xa7   :  { %v501_v22 = vpop.f32.mrf.mxu1  ;;  %v527_v26 = vpop.f32.mrf.mxu3  ;;  %v488_v27 = vadd.f32 %v1243_v17, %v487_v21  ;;  %v514_v28 = vadd.f32 %v513_v15, %v500_v24  ;;  %v1246_v15 = vld [vmem:[%s1581_s8] ss:$0 sm:$0xff] }
  0xa9   :  { %v502_v30 = vadd.f32 %v501_v22, %v488_v27  ;;  %v528_v33 = vadd.f32 %v527_v26, %v514_v28 }
  0xae   :  { %v515_v23 = vpop.f32.mrf.mxu2 }
  0xaf   :  { %v516_v35 = vadd.f32 %v515_v23, %v502_v30  ;;  %v529_v37 = vpop.f32.mrf.mxu3 }
  0xb1   :  { %v530_v38 = vadd.f32 %v529_v37, %v516_v35 }
  0xb6   :  { %v569_v34 = vpop.f32.mrf.mxu2 }
  0xbe   :  { %v541_v31 = vpop.f32.mrf.mxu0  ;;  %v571_v45 = vpop.f32.mrf.mxu2 }
  0xbf   :  { %v555_v32 = vpop.f32.mrf.mxu1  ;;  %v542_v36 = vadd.f32 %v541_v31, %v528_v33 }
  0xc1   :  { %v556_v39 = vadd.f32 %v555_v32, %v542_v36 }
  0xc3   :  { %v570_v43 = vadd.f32 %v569_v34, %v556_v39 }
  0xc5   :  { %v574_v47 = vmax.f32 %v570_v43, 0.0 }
  0xc6   :  { %v543_v40 = vpop.f32.mrf.mxu0 }
  0xc7   :  { %v544_v41 = vadd.f32 %v543_v40, %v530_v38  ;;  %v557_v42 = vpop.f32.mrf.mxu1 }
  0xc9   :  { %v558_v44 = vadd.f32 %v557_v42, %v544_v41 }
  0xcb   :  { %v572_v46 = vadd.f32 %v571_v45, %v558_v44 }
  0xcd   :  { %v575_v48 = vmax.f32 %v572_v46, 0.0 }
  0xcf   :  { %v576_v49 = vpack.c.bf16 %v575_v48, %v574_v47 }
  0xd1   :  { %653 = vmatmul.bf16.vlgmr.msrb.gmra.mxu3 %v576_v49 }
 0x154   :  { %v654_v58 = vpop.f32.mrf.mxu3 }
 0x155   :  { %v655_v60 = vadd.f32 %v1244_v59, %v654_v58 }
 0x157   :  { %v659_v63 = vmax.f32 %v655_v60, 0.0 }
 0x15c   :  { %v656_v61 = vpop.f32.mrf.mxu3 }
 0x15d   :  { %v657_v62 = vadd.f32 %v1244_v59, %v656_v61 }
 0x15f   :  { %v660_v0 = vmax.f32 %v657_v62, 0.0 }
 0x161   :  { %v661_v1 = vpack.c.bf16 %v660_v0, %v659_v63 }
 0x163   :  { %738 = vmatmul.bf16.vlgmr.msra.gmra.mxu2 %v661_v1 }
 0x1e6   :  { %v739_v6 = vpop.f32.mrf.mxu2 }
 0x1e7   :  { %v740_v8 = vadd.f32 %v1245_v7, %v739_v6 }
 0x1e9   :  { %v744_v11 = vmax.f32 %v740_v8, 0.0 }
 0x1ee   :  { %v741_v9 = vpop.f32.mrf.mxu2 }
 0x1ef   :  { %v742_v10 = vadd.f32 %v1245_v7, %v741_v9 }
 0x1f1   :  { %v745_v12 = vmax.f32 %v742_v10, 0.0 }
 0x1f3   :  { %v746_v13 = vpack.c.bf16 %v745_v12, %v744_v11 }
 0x1f5   :  { %823 = vmatmul.bf16.vlgmr.msra.gmra.mxu0 %v746_v13 }
 0x272   :  { %v824_v14 = vpop.f32.mrf.mxu0 }
 0x273   :  { %v825_v17 = vadd.f32 %v1246_v15, %v824_v14 }
 0x27a   :  { %v826_v16 = vpop.f32.mrf.mxu0 }
 0x27b   :  { %v827_v18 = vadd.f32 %v1246_v15, %v826_v16 }
 0x27d   :  { %v1241_v19 = vpack.c.bf16 %v827_v18, %v825_v17 }
 0x27f   :  { %1242 = vst [vmem:[%s1582_s9] sm:$0xff] %v1241_v19  }

</bundles_post_ra>
